<compile_context>
chip_gen: v6e
topology: v6e:2x2x1
jax: 0.10.0
libtpu: 0.0.40
codegen_flags: <defaults>
</compile_context>

<pallas_src>
import functools

import jax
import jax.numpy as jnp
from jax.experimental import pallas as pl
from jax.experimental.pallas import tpu as pltpu


def _round_up(n, m):
    return ((n + m - 1) // m) * m


def _sublane_multiple(dtype):
    # f32 -> 8, bf16/f16 -> 16, int8/fp8 -> 32 (sub-32-bit dtypes pack sublanes).
    return max(8, 32 // jnp.dtype(dtype).itemsize)


def _physical_vmem_bytes():
    try:
        return int(pltpu.get_tpu_info().vmem_capacity_bytes)
    except Exception:
        return 64 * 1024 * 1024  # conservative fallback (v7x per-TC VMEM)


def _layernorm_kernel(gamma_ref, beta_ref, x_ref, o_ref, *, eps, features):
    # The tile is VMEM-resident and the kernel is HBM-bound, so the extra
    # VPU/XLU/EUP work of an exact two-pass variance + exact divide hides
    # completely under the DMA stream (max-of-units), buying back exact
    # PyTorch numerics for free.
    x = x_ref[...].astype(jnp.float32)
    mean = jnp.sum(x, axis=-1, keepdims=True) * jnp.float32(1.0 / features)
    centered = x - mean
    var_unbiased = jnp.sum(centered * centered, axis=-1, keepdims=True) * (
        jnp.float32(1.0 / (features - 1)))          # torch.std: ddof = 1
    std = jnp.sqrt(var_unbiased)

    gamma = gamma_ref[...].astype(jnp.float32)      # (1, F), resident
    beta = beta_ref[...].astype(jnp.float32)        # (1, F), resident
    o_ref[...] = (gamma * (centered / (std + jnp.float32(eps))) + beta).astype(
        o_ref.dtype)


def layernorm_forward(x, gamma, beta, *, eps=1e-6, row_tile=None,
                      donate_x=False):
    """LayerNorm over the last axis of x (any leading shape), torch semantics.

    Streams x in its native dtype and returns the same dtype.
    """
    orig_shape = x.shape
    F = orig_shape[-1]
    assert F >= 2, "unbiased std needs features >= 2"
    # NOTE: lane-dense (unmasked) output stores want F to be a multiple of 128;
    # smaller / non-multiple F still works (block last dim == full array dim)
    # but every store takes the masked path.  Tiny F is better left to XLA.

    R = 1
    for d in orig_shape[:-1]:
        R *= d

    x2 = x.reshape(R, F)            # native dtype; no f32 round-trip in HBM
    g2 = gamma.reshape(1, F)
    b2 = beta.reshape(1, F)

    itemsize = jnp.dtype(x.dtype).itemsize
    sub = _sublane_multiple(x.dtype)
    vmem_phys = _physical_vmem_bytes()

    # Degenerate tiny-R guard only: pad up to one sublane group (rare, cheap).
    R_used = R
    if R < sub:
        R_used = sub
        x2 = jnp.pad(x2, ((0, R_used - R), (0, 0)))

    if row_tile is None:
        # Byte-budget-driven tile.  Per streamed row the pipeline holds:
        #   double-buffered in + out native blocks  -> 4 * F * itemsize
        #   ~2 f32 temporaries in the body (x, centered) -> 8 * F
        # Budget = half the physical VMEM of this generation, capped at 48 MiB
        # (v7x: 32 MiB of its 64 MiB/TC; v5e/v6e: 48 MiB of 128 MiB).
        budget = min(vmem_phys // 2, 48 * 1024 * 1024)
        per_row_bytes = 4 * F * itemsize + 8 * F
        row_tile = max(sub, budget // per_row_bytes)
    tr = max(sub, (row_tile // sub) * sub)

    # Keep >= 4 grid steps when there is enough work so the single "parallel"
    # axis can be split evenly across the 2 TensorCores on v7x.
    if R_used > 4 * sub:
        tr = min(tr, _round_up(-(-R_used // 4), sub))
    tr = min(tr, _round_up(R_used, sub))

    # Ragged grid: the last block's OOB rows are masked on store and per-row
    # reductions mean their garbage can never leak into valid rows.
    grid = (pl.cdiv(R_used, tr),)

    # Explicit scoped-VMEM limit from the actual footprint (incl. f32 temps).
    blk_native = tr * F * itemsize
    blk_f32 = tr * F * 4
    footprint = 4 * blk_native + 2 * blk_f32 + 4 * F * 4   # + gamma/beta
    vmem_limit = int(min(vmem_phys, max(footprint + (8 << 20), 16 << 20)))

    kernel = functools.partial(_layernorm_kernel, eps=eps, features=F)

    # Optional donation: alias the streamed input (arg 2) to the output.
    io_alias = {2: 0} if (donate_x and R_used == R) else {}

    out2 = pl.pallas_call(
        kernel,
        out_shape=jax.ShapeDtypeStruct((R_used, F), x.dtype),
        grid=grid,
        in_specs=[
            pl.BlockSpec((1, F), lambda i: (0, 0)),    # gamma (resident)
            pl.BlockSpec((1, F), lambda i: (0, 0)),    # beta  (resident)
            pl.BlockSpec((tr, F), lambda i: (i, 0)),   # x tile (ragged-OK)
        ],
        out_specs=pl.BlockSpec((tr, F), lambda i: (i, 0)),
        input_output_aliases=io_alias,
        compiler_params=pltpu.CompilerParams(
            dimension_semantics=("parallel",),         # shards rows on v7x 2xTC
            vmem_limit_bytes=vmem_limit),
    )(g2, b2, x2)

    if R_used != R:
        out2 = out2[:R]
    return out2.reshape(orig_shape)


def encoder_forward(x, src_mask, layers, gamma, beta, *, eps=1e-6):
    """Encoder.forward: apply opaque sub-layers sequentially, then LayerNorm."""
    for layer in layers:
        x = layer(x, src_mask)      # plain-JAX glue (opaque nn.Modules in spec)
    return layernorm_forward(x, gamma, beta, eps=eps)


if __name__ == "__main__":
    B, S, F = 2, 8, 32
    key = jax.random.PRNGKey(0)
    kx, k1, k2 = jax.random.split(key, 3)

    x = jax.random.normal(kx, (B, S, F), dtype=jnp.float32)
    # src_mask: broadcastable (B, S, 1), mask out the last two positions of
    # each sequence (deterministic synthetic mask).
    src_mask = (jnp.arange(S) < S - 2).astype(jnp.float32)[None, :, None]
    src_mask = jnp.broadcast_to(src_mask, (B, S, 1))

    # Two deterministic synthetic encoder layers (residual masked projections).
    W1 = jax.random.normal(k1, (F, F), dtype=jnp.float32) * 0.1
    W2 = jax.random.normal(k2, (F, F), dtype=jnp.float32) * 0.1

    def make_layer(W):
        def layer(h, mask):
            return h + jnp.tanh(jnp.einsum("bsf,fg->bsg", h, W)) * mask
        return layer

    layers = [make_layer(W1), make_layer(W2)]

    # LayerNorm params per the module __init__: gamma=ones(F), beta=zeros(F).
    gamma = jnp.ones((F,), dtype=jnp.float32)
    beta = jnp.zeros((F,), dtype=jnp.float32)

    out = encoder_forward(x, src_mask, layers, gamma, beta, eps=1e-6)
    out = jax.block_until_ready(out)

    # Pure-JAX reference mirroring the PyTorch math exactly.
    y = x
    for layer in layers:
        y = layer(y, src_mask)
    mean = y.mean(-1, keepdims=True)
    std = jnp.sqrt(((y - mean) ** 2).sum(-1, keepdims=True) / (F - 1))
    ref = gamma * (y - mean) / (std + 1e-6) + beta

    # Exact divide + two-pass variance in-kernel => tight tolerance.
    assert out.shape == ref.shape and out.dtype == ref.dtype
    assert jnp.allclose(out, ref, atol=1e-4, rtol=1e-4), "mismatch vs reference"

    print("KERNEL_OK")
</pallas_src>

<mosaic_0001>
module attributes {stable_mosaic.version = 11 : i64} {
  func.func @_layernorm_kernel(%arg0: i32, %arg1: memref<1x32xf32, #tpu.memory_space<vmem>>, %arg2: memref<1x32xf32, #tpu.memory_space<vmem>>, %arg3: memref<16x32xf32, #tpu.memory_space<vmem>>, %arg4: memref<16x32xf32, #tpu.memory_space<vmem>>) attributes {dimension_semantics = [#tpu.dimension_semantics<parallel>], iteration_bounds = array<i64: 1>, scalar_prefetch = 0 : i64, scratch_operands = 0 : i64, tpu.core_type = #tpu.core_type<tc>, window_params = [{pipeline_mode = #tpu.pipeline_mode<synchronous>, transform_indices = @transform_0, window_bounds = array<i64: 1, 32>}, {pipeline_mode = #tpu.pipeline_mode<synchronous>, transform_indices = @transform_1, window_bounds = array<i64: 1, 32>}, {transform_indices = @transform_2, window_bounds = array<i64: 16, 32>}, {transform_indices = @transform_3, window_bounds = array<i64: 16, 32>}]} {
    %c0 = arith.constant 0 : index
    %c0_0 = arith.constant 0 : index
    %0 = vector.load %arg3[%c0, %c0_0] : memref<16x32xf32, #tpu.memory_space<vmem>>, vector<16x32xf32>
    %cst = arith.constant dense<0.000000e+00> : vector<16xf32>
    %1 = vector.multi_reduction <add>, %0, %cst [1] : vector<16x32xf32> to vector<16xf32>
    %2 = vector.shape_cast %1 : vector<16xf32> to vector<16x1xf32>
    %cst_1 = arith.constant 3.125000e-02 : f32
    %3 = vector.broadcast %cst_1 : f32 to vector<16x1xf32>
    %4 = arith.mulf %2, %3 : vector<16x1xf32>
    %5 = vector.broadcast %4 : vector<16x1xf32> to vector<16x32xf32>
    %6 = arith.subf %0, %5 : vector<16x32xf32>
    %7 = arith.mulf %6, %6 : vector<16x32xf32>
    %cst_2 = arith.constant dense<0.000000e+00> : vector<16xf32>
    %8 = vector.multi_reduction <add>, %7, %cst_2 [1] : vector<16x32xf32> to vector<16xf32>
    %9 = vector.shape_cast %8 : vector<16xf32> to vector<16x1xf32>
    %cst_3 = arith.constant 0.0322580636 : f32
    %10 = vector.broadcast %cst_3 : f32 to vector<16x1xf32>
    %11 = arith.mulf %9, %10 : vector<16x1xf32>
    %12 = math.sqrt %11 : vector<16x1xf32>
    %c0_4 = arith.constant 0 : index
    %c0_5 = arith.constant 0 : index
    %13 = vector.load %arg1[%c0_4, %c0_5] : memref<1x32xf32, #tpu.memory_space<vmem>>, vector<1x32xf32>
    %c0_6 = arith.constant 0 : index
    %c0_7 = arith.constant 0 : index
    %14 = vector.load %arg2[%c0_6, %c0_7] : memref<1x32xf32, #tpu.memory_space<vmem>>, vector<1x32xf32>
    %cst_8 = arith.constant 9.99999997E-7 : f32
    %15 = vector.broadcast %cst_8 : f32 to vector<16x1xf32>
    %16 = arith.addf %12, %15 : vector<16x1xf32>
    %17 = vector.broadcast %16 : vector<16x1xf32> to vector<16x32xf32>
    %18 = arith.divf %6, %17 : vector<16x32xf32>
    %19 = vector.broadcast %13 : vector<1x32xf32> to vector<16x32xf32>
    %20 = arith.mulf %19, %18 : vector<16x32xf32>
    %21 = vector.broadcast %14 : vector<1x32xf32> to vector<16x32xf32>
    %22 = arith.addf %20, %21 : vector<16x32xf32>
    %c0_9 = arith.constant 0 : index
    %c0_10 = arith.constant 0 : index
    %23 = vector.load %arg4[%c0_9, %c0_10] : memref<16x32xf32, #tpu.memory_space<vmem>>, vector<16x32xf32>
    tpu.vector_store %arg4[%c0_9, %c0_10], %22 {strides = array<i32>} : memref<16x32xf32, #tpu.memory_space<vmem>>, vector<16x32xf32>,
    return
  }
  func.func @transform_0(%arg0: i32) -> (i32, i32) {
    %c0_i32 = arith.constant 0 : i32
    %c0_i32_0 = arith.constant 0 : i32
    %c0_i32_1 = arith.constant 0 : i32
    return %c0_i32, %c0_i32_0 : i32, i32
  }
  func.func @transform_1(%arg0: i32) -> (i32, i32) {
    %c0_i32 = arith.constant 0 : i32
    %c0_i32_0 = arith.constant 0 : i32
    %c0_i32_1 = arith.constant 0 : i32
    return %c0_i32, %c0_i32_0 : i32, i32
  }
  func.func @transform_2(%arg0: i32) -> (i32, i32) {
    %c0_i32 = arith.constant 0 : i32
    %c0_i32_0 = arith.constant 0 : i32
    return %arg0, %c0_i32 : i32, i32
  }
  func.func @transform_3(%arg0: i32) -> (i32, i32) {
    %c0_i32 = arith.constant 0 : i32
    %c0_i32_0 = arith.constant 0 : i32
    return %arg0, %c0_i32 : i32, i32
  }
}

</mosaic_0001>

<bundles_post_ra>
// kernel: tpu_custom_call.1
= control target key start
LH: loop header
LB: loop body
LE: loop exit
PB: predicated region body
PF: predicated region fallthrough
CT: control target
= control target key end

     0   :  { %8 = vsyncpa [#allocation3], 0  ;;  %s252_s0 = inlined_call_operand.hbm [shape: f32[1,32], index: 0, kind: input, shape index: {}]   ;;  %s253_s1 = inlined_call_operand.vmem [shape: f32[1,32], index: 1, kind: input, shape index: {}]   ;;  %s254_s2 = inlined_call_operand.hbm [shape: f32[16,32], index: 2, kind: input, shape index: {}]   ;;  %s255_s3 = inlined_call_operand.hbm [shape: f32[16,32], index: 3, kind: output, shape index: {}]  }
   0x1   :  { %9 = vsyncpa [#allocation6], 0 }
   0x2   :  { %10 = vsyncpa [#allocation4], 0  ;;  %s203_s12 = smov [#allocation2]   ;;  %s204_s14 = smov [#allocation5]  }
   0x3   :  { %s17_s13 = sshll.u32 %s203_s12, 4  ;;  %s28_s15 = sshll.u32 %s204_s14, 4  ;;  %s18_s13 = int_to_ptr.vmem [resolvable:$true] %s17_s13  ;;  %s29_s15 = int_to_ptr.vmem [resolvable:$true] %s28_s15 }
   0x4   :  { %s145_s16 = scalar_lea.vmem %s18_s13, 16  ;;  %s149_s17 = scalar_lea.vmem %s18_s13, 32 }
   0x5   :  { %p146_p0 = scmp.ne.s32.totalorder %s18_s13, %s145_s16  ;;  %p150_p1 = scmp.lt.s32.totalorder %s18_s13, %s18_s13 }
   0x6   :  { %p151_p2 = scmp.lt.s32.totalorder %s149_s17, %s145_s16 }
   0x8   :  { %p152_p3 = por %p151_p2, %p150_p1 }
   0xa   :  { %p153_p4 = pnand %p152_p3, %p146_p0 }
   0xc   :  { %156 = shalt.err (!%p153_p4)
}
   0xd   :  { %20 = dma.hbm_to_vmem [thread:$0]  %s252_s0, 16, %s18_s13, [#allocation3]  }
   0xe   :  { %s165_s20 = scalar_lea.vmem %s29_s15, 256  ;;  %p170_p6 = scmp.lt.s32.totalorder %s29_s15, %s29_s15 }
   0xf   :  { %p166_p5 = scmp.ne.s32.totalorder %s29_s15, %s165_s20  ;;  %p171_p7 = scmp.lt.s32.totalorder %s165_s20, %s165_s20 }
  0x11   :  { %p172_p8 = por %p171_p7, %p170_p6 }
  0x13   :  { %p173_p9 = pnand %p172_p8, %p166_p5 }
  0x15   :  { %176 = shalt.err (!%p173_p9)
}
  0x16   :  { %s205_s21 = smov 128   ;;  %s206_s22 = smov 8  }
  0x17   :  { %34 = dma.hbm_to_vmem [thread:$0]  %s254_s2, 256, %s29_s15, [#allocation6], %s205_s21, %s205_s21, %s206_s22  }
  0x18   :  { %197 = dma.done.wait [#allocation3], 16  }
  0x19   :  { %198 = vsyncadd [#allocation3], 4294967280 }
  0x1a   :  { %199 = dma.done.wait [#allocation6], 256  }
  0x1b   :  { %200 = vsyncadd [#allocation6], 4294967040  ;;  %vm43_vm0 = vcmask 261120   ;;  %v41_v0 = vld [vmem:[#allocation5] sm:$0xff]  ;;  %v42_v1 = vld [vmem:[#allocation5 + $0x8] sm:$0xff]  ;;  %s207_s25 = smov [#allocation7]  }
  0x1c   :  { %v44_v2 = vsel %vm43_vm0, %v41_v0, 0.0  ;;  %v47_v3 = vsel %vm43_vm0, %v42_v1, 0.0  ;;  %v122_v31 = vld [vmem:[#allocation2] ss:$0 sm:$0xff]  ;;  %s109_s26 = sshll.u32 %s207_s25, 4  ;;  %s110_s26 = int_to_ptr.vmem [resolvable:$true] %s109_s26 }
  0x1d   :  { %45 = vadd.xlane.f32.xlu0 %v44_v2  ;;  %v123_v33 = vld [vmem:[%s253_s1] ss:$0 sm:$0xff]  ;;  %s177_s27 = scalar_lea.vmem %s110_s26, 256  ;;  %p182_p11 = scmp.lt.s32.totalorder %s110_s26, %s110_s26 }
  0x1e   :  { %p178_p10 = scmp.ne.s32.totalorder %s110_s26, %s177_s27  ;;  %p183_p12 = scmp.lt.s32.totalorder %s177_s27, %s177_s27 }
  0x20   :  { %p184_p13 = por %p183_p12, %p182_p11 }
  0x21   :  { %48 = vadd.xlane.f32.xlu0 %v47_v3 }
  0x22   :  { %p185_p0 = pnand %p184_p13, %p178_p10 }
  0xa6   :  { %v46_v4 = vpop.xlane.xlu0 %45 }
  0xa7   :  { %v50_v5 = vmul.f32 0.03125, %v46_v4 }
  0xa9   :  { %v52_v6 = vsub.f32 %v41_v0, %v50_v5 }
  0xaa   :  { %v49_v7 = vpop.xlane.xlu0 %48 }
  0xab   :  { %v51_v8 = vmul.f32 0.03125, %v49_v7  ;;  %v54_v9 = vmul.f32 %v52_v6, %v52_v6 }
  0xad   :  { %v53_v10 = vsub.f32 %v42_v1, %v51_v8  ;;  %v56_v11 = vsel %vm43_vm0, %v54_v9, 0.0 }
  0xae   :  { %57 = vadd.xlane.f32.xlu1 %v56_v11 }
  0xaf   :  { %v55_v12 = vmul.f32 %v53_v10, %v53_v10 }
  0xb1   :  { %v59_v13 = vsel %vm43_vm0, %v55_v12, 0.0 }
  0xb2   :  { %60 = vadd.xlane.f32.xlu1 %v59_v13 }
 0x137   :  { %v58_v14 = vpop.xlane.xlu1 %57 }
 0x138   :  { %v62_v15 = vmul.f32 0.032258064, %v58_v14 }
 0x13a   :  { %129 = vrsqrt.f32 %v62_v15  ;;  %vm66_vm1 = vcmp.eq.f32.partialorder %v62_v15, inf  ;;  %v69_v20 = vand.u32 2147483648, %v62_v15  ;;  %vm68_vm2 = vcmp.eq.f32.partialorder %v62_v15, 0.0 }
 0x13b   :  { %v61_v16 = vpop.xlane.xlu1 %60 }
 0x13c   :  { %v63_v17 = vmul.f32 0.032258064, %v61_v16 }
 0x13e   :  { %131 = vrsqrt.f32 %v63_v17  ;;  %vm73_vm3 = vcmp.eq.f32.partialorder %v63_v17, inf  ;;  %v76_v26 = vand.u32 2147483648, %v63_v17  ;;  %vm75_vm4 = vcmp.eq.f32.partialorder %v63_v17, 0.0 }
 0x147   :  { %v130_v18 = vpop.eup %129 }
 0x148   :  { %v65_v19 = vmul.f32 %v130_v18, %v62_v15 }
 0x14a   :  { %v67_v21 = vsel %vm66_vm1, %v62_v15, %v65_v19 }
 0x14b   :  { %v132_v22 = vpop.eup %131  ;;  %v70_v23 = vsel %vm68_vm2, %v69_v20, %v67_v21 }
 0x14c   :  { %v80_v24 = vadd.f32 1e-06, %v70_v23  ;;  %v72_v25 = vmul.f32 %v132_v22, %v63_v17 }
 0x14e   :  { %133 = vrcp.f32 %v80_v24  ;;  %v74_v27 = vsel %vm73_vm3, %v63_v17, %v72_v25 }
 0x14f   :  { %v77_v28 = vsel %vm75_vm4, %v76_v26, %v74_v27 }
 0x150   :  { %v81_v29 = vadd.f32 1e-06, %v77_v28 }
 0x152   :  { %135 = vrcp.f32 %v81_v29 }
 0x15b   :  { %v134_v30 = vpop.eup %133 }
 0x15c   :  { %v83_v32 = vmul.f32 %v134_v30, %v52_v6 }
 0x15e   :  { %v92_v34 = vmul.f32 %v122_v31, %v83_v32 }
 0x15f   :  { %v136_v35 = vpop.eup %135 }
 0x160   :  { %v85_v36 = vmul.f32 %v136_v35, %v53_v10  ;;  %v100_v37 = vadd.f32 %v123_v33, %v92_v34 }
 0x162   :  { %v93_v38 = vmul.f32 %v122_v31, %v85_v36  ;;  %102 = vst.msk [vmem:[#allocation7] sm:$0xff] %vm43_vm0, %v100_v37 }
 0x164   :  { %v101_v39 = vadd.f32 %v123_v33, %v93_v38 }
 0x166   :  { %103 = vst.msk [vmem:[#allocation7 + $0x8] sm:$0xff] %vm43_vm0, %v101_v39 }
 0x167   :  { %188 = shalt.err (!%p185_p0)
}
 0x168   :  { %115 = dma.vmem_to_hbm [thread:$0]  %s110_s26, 256, %s255_s3, [#allocation4], %s205_s21, %s205_s21, %s206_s22  }
 0x169   :  { %201 = dma.done.wait [#allocation4], 256  }
 0x16a   :  { %202 = vsyncadd [#allocation4], 4294967040 }
 0x16b   :  { %119 = vsyncpa [#allocation3], 1 }
 0x16c   :  { %120 = vsyncpa [#allocation6], 1 }
 0x16d   :  { %121 = vsyncpa [#allocation4], 1 }

</bundles_post_ra>
